<compile_context>
chip_gen: v5e
topology: v5e:2x2
jax: 0.10.0
libtpu: 0.0.40
codegen_flags: <defaults>
</compile_context>

<pallas_src>
import functools

import numpy as np
import jax
import jax.numpy as jnp
from jax import lax
from jax.experimental import pallas as pl
from jax.experimental.pallas import tpu as pltpu

# ----------------------------- configuration --------------------------------
S = 128        # raw-token buffer width per sentence (one full lane row)
V = 128        # vocabulary size (one full lane row, power of two)
L = 20         # max_sentence_length (and the hard-coded pad-to-20 length)
TILE_B = 256   # sentences per grid step (sublane-aligned, ~128 KiB / block)

PAD_RAW, BOS_RAW, EOS_RAW = 0, 1, 2   # raw ids of the special tokens


# ------------------------------- kernel -------------------------------------
def tokenizer_kernel(ids_ref, vocab_ref, out_ref, *, bos, eos, pad):
    """One tile of sentences.

    ids_ref:   [TILE_B, S] int32  raw token ids; lane S-1 holds the sentence
                                  length (packed by the wrapper).
    vocab_ref: [1, V]      int32  lookup table raw_id -> vocab_id
    out_ref:   [TILE_B, V] int32  lane-dense output; columns [:L] are the
                                  tokenized + truncated + padded + mapped ids.
    """
    ids = ids_ref[...]                                     # [T, S] int32
    lengths = ids[:, S - 1:S]                              # [T, 1] packed lengths

    # shifted[b, j] = ids[b, j-1] for j >= 1 (wrapped lane 0 is overwritten by
    # the bos branch).  XLU lane rotate, stays int32, no MXU.
    shifted = pltpu.roll(ids, shift=1, axis=1)             # [T, S]

    # Assemble raw sequence: [bos] + tokens + [eos], truncate to L, pad to L.
    pos = lax.broadcasted_iota(jnp.int32, ids.shape, 1)    # [T, S]
    raw = jnp.where(pos == 0, bos,
          jnp.where(pos <= lengths, shifted,
          jnp.where(pos == lengths + 1, eos, pad)))        # [T, S]

    # Cheap in-bounds clamp (V is a power of two) so the promised-in-bounds
    # gather below can never read garbage even on a bad host-side id.
    raw = jnp.bitwise_and(raw, V - 1)

    # Vocabulary lookup: per-lane dynamic gather from the sublane-broadcast
    # table.  (A stride-0 sublane-broadcast read of vocab_ref would save the
    # broadcast_in_dim; kept as the known-good lowering path.)
    table = jnp.broadcast_to(vocab_ref[...], ids.shape)    # [T, V]
    out_ref[...] = jnp.take_along_axis(table, raw, axis=1,
                                       mode="promise_in_bounds")


# ------------------------------- wrapper -------------------------------------
def text_tokenizer_forward(token_ids, lengths, vocab_table,
                           *, bos=BOS_RAW, eos=EOS_RAW, pad=PAD_RAW,
                           tile_b=TILE_B):
    """token_ids: [N, S] int32, lengths: [N] int32, vocab_table: [1, V] int32."""
    n = token_ids.shape[0]

    # Pack per-sentence lengths into lane S-1 of the ids block (that lane is
    # never consumed by the 20-wide output), so the kernel has one operand.
    ids = token_ids.astype(jnp.int32).at[:, S - 1].set(
        lengths.reshape(-1).astype(jnp.int32))

    n_blocks = pl.cdiv(n, tile_b)
    n_padded = n_blocks * tile_b
    if n_padded != n:
        ids = jnp.pad(ids, ((0, n_padded - n), (0, 0)))

    kernel = functools.partial(tokenizer_kernel, bos=bos, eos=eos, pad=pad)
    grid_spec = pltpu.PrefetchScalarGridSpec(
        num_scalar_prefetch=0,
        grid=(n_blocks,),
        in_specs=[
            pl.BlockSpec((tile_b, S), lambda i: (i, 0)),
            pl.BlockSpec((1, V), lambda i: (0, 0)),
        ],
        out_specs=pl.BlockSpec((tile_b, V), lambda i: (i, 0)),
    )
    out = pl.pallas_call(
        kernel,
        out_shape=jax.ShapeDtypeStruct((n_padded, V), jnp.int32),
        grid_spec=grid_spec,
        compiler_params=pltpu.CompilerParams(
            dimension_semantics=("parallel",)),   # v7x: 2 TCs split the blocks
    )(ids, vocab_table)

    # Lane-dense kernel output; slice to the module's 20-token rows here.
    return out[:n, :L]


# ----------------------------- reference -------------------------------------
def reference_forward(token_ids, lengths, vocab_table, bos, eos, pad):
    token_ids = np.asarray(token_ids)
    lengths = np.asarray(lengths).reshape(-1)
    vocab = np.asarray(vocab_table).reshape(-1)
    n = token_ids.shape[0]
    out = np.zeros((n, L), np.int32)
    for b in range(n):
        toks = [bos] + list(token_ids[b, :lengths[b]]) + [eos]
        toks = toks[:L]                 # truncate to max_sentence_length
        while len(toks) < 20:           # pad to 20 (as in the PyTorch module)
            toks.append(pad)
        out[b] = [vocab[t] for t in toks]
    return out


# --------------------------------- main ---------------------------------------
if __name__ == "__main__":
    key = jax.random.PRNGKey(0)
    k_ids, k_len, k_vocab = jax.random.split(key, 3)

    N = 500   # total sentences (not a tile multiple: exercises the pad path)
    # "tokenizer" output: raw token ids (avoid the special ids 0/1/2).
    token_ids = jax.random.randint(k_ids, (N, S), 3, V, dtype=jnp.int32)
    # per-sentence valid-token counts (some exceed L-2 to exercise truncation)
    lengths = jax.random.randint(k_len, (N,), 1, 25, dtype=jnp.int32)
    # deterministic "vocabulary": a permutation mapping raw id -> vocab id
    vocab_table = jax.random.permutation(
        k_vocab, jnp.arange(V, dtype=jnp.int32)).reshape(1, V)

    out = text_tokenizer_forward(token_ids, lengths, vocab_table)
    out = jax.block_until_ready(out)

    expected = reference_forward(token_ids, lengths, vocab_table,
                                 BOS_RAW, EOS_RAW, PAD_RAW)
    np.testing.assert_array_equal(np.asarray(out), expected)

    print("KERNEL_OK")
</pallas_src>

<mosaic_0001>
module attributes {stable_mosaic.version = 11 : i64} {
  func.func @tokenizer_kernel(%arg0: i32, %arg1: memref<256x128xi32, #tpu.memory_space<vmem>>, %arg2: memref<1x128xi32, #tpu.memory_space<vmem>>, %arg3: memref<256x128xi32, #tpu.memory_space<vmem>>) attributes {dimension_semantics = [#tpu.dimension_semantics<parallel>], iteration_bounds = array<i64: 2>, scalar_prefetch = 0 : i64, scratch_operands = 0 : i64, tpu.core_type = #tpu.core_type<tc>, window_params = [{transform_indices = @transform_0, window_bounds = array<i64: 256, 128>}, {pipeline_mode = #tpu.pipeline_mode<synchronous>, transform_indices = @transform_1, window_bounds = array<i64: 1, 128>}, {transform_indices = @transform_2, window_bounds = array<i64: 256, 128>}]} {
    %c0 = arith.constant 0 : index
    %c0_0 = arith.constant 0 : index
    %0 = vector.load %arg1[%c0, %c0_0] : memref<256x128xi32, #tpu.memory_space<vmem>>, vector<256x128xi32>
    %1 = vector.extract_strided_slice %0 {offsets = [0, 127], sizes = [256, 1], strides = [1, 1]} : vector<256x128xi32> to vector<256x1xi32>
    %c1_i32 = arith.constant 1 : i32
    %2 = tpu.dynamic_rotate %0 by %c1_i32 dim 1 : vector<256x128xi32>, i32 -> vector<256x128xi32>
    %3 = tpu.iota {dimensions = array<i32: 1>} : vector<256x128xi32>
    %c0_i32 = arith.constant 0 : i32
    %4 = vector.broadcast %c0_i32 : i32 to vector<256x128xi32>
    %5 = arith.cmpi eq, %3, %4 : vector<256x128xi32>
    %6 = vector.broadcast %1 : vector<256x1xi32> to vector<256x128xi32>
    %7 = arith.cmpi sle, %3, %6 : vector<256x128xi32>
    %c1_i32_1 = arith.constant 1 : i32
    %8 = vector.broadcast %c1_i32_1 : i32 to vector<256x1xi32>
    %9 = arith.addi %1, %8 : vector<256x1xi32>
    %10 = vector.broadcast %9 : vector<256x1xi32> to vector<256x128xi32>
    %11 = arith.cmpi eq, %3, %10 : vector<256x128xi32>
    %c2_i32 = arith.constant 2 : i32
    %c0_i32_2 = arith.constant 0 : i32
    %12 = vector.broadcast %c2_i32 : i32 to vector<256x128xi32>
    %13 = vector.broadcast %c0_i32_2 : i32 to vector<256x128xi32>
    %14 = arith.select %11, %12, %13 : vector<256x128xi1>, vector<256x128xi32>
    %15 = arith.select %7, %2, %14 : vector<256x128xi1>, vector<256x128xi32>
    %c1_i32_3 = arith.constant 1 : i32
    %16 = vector.broadcast %c1_i32_3 : i32 to vector<256x128xi32>
    %17 = arith.select %5, %16, %15 : vector<256x128xi1>, vector<256x128xi32>
    %c127_i32 = arith.constant 127 : i32
    %18 = vector.broadcast %c127_i32 : i32 to vector<256x128xi32>
    %19 = arith.andi %17, %18 : vector<256x128xi32>
    %c0_4 = arith.constant 0 : index
    %c0_5 = arith.constant 0 : index
    %20 = vector.load %arg2[%c0_4, %c0_5] : memref<1x128xi32, #tpu.memory_space<vmem>>, vector<1x128xi32>
    %21 = vector.shape_cast %20 : vector<1x128xi32> to vector<1x128xi32>
    %22 = vector.broadcast %21 : vector<1x128xi32> to vector<256x128xi32>
    %23 = vector.shape_cast %19 : vector<256x128xi32> to vector<256x128x1xi32>
    %24 = vector.shape_cast %23 : vector<256x128x1xi32> to vector<256x128xi32>
    %25 = tpu.dynamic_gather %22[%24] in [1] : vector<256x128xi32>, vector<256x128xi32> -> vector<256x128xi32>
    %c0_6 = arith.constant 0 : index
    %c0_7 = arith.constant 0 : index
    %26 = vector.load %arg3[%c0_6, %c0_7] : memref<256x128xi32, #tpu.memory_space<vmem>>, vector<256x128xi32>
    tpu.vector_store %arg3[%c0_6, %c0_7], %25 {strides = array<i32>} : memref<256x128xi32, #tpu.memory_space<vmem>>, vector<256x128xi32>,
    return
  }
  func.func @transform_0(%arg0: i32) -> (i32, i32) {
    %c0_i32 = arith.constant 0 : i32
    %c0_i32_0 = arith.constant 0 : i32
    return %arg0, %c0_i32 : i32, i32
  }
  func.func @transform_1(%arg0: i32) -> (i32, i32) {
    %c0_i32 = arith.constant 0 : i32
    %c0_i32_0 = arith.constant 0 : i32
    %c0_i32_1 = arith.constant 0 : i32
    return %c0_i32, %c0_i32_0 : i32, i32
  }
  func.func @transform_2(%arg0: i32) -> (i32, i32) {
    %c0_i32 = arith.constant 0 : i32
    %c0_i32_0 = arith.constant 0 : i32
    return %arg0, %c0_i32 : i32, i32
  }
}

</mosaic_0001>

<bundles_post_ra>
// kernel: tpu_custom_call.1
= control target key start
LH: loop header
LB: loop body
LE: loop exit
PB: predicated region body
PF: predicated region fallthrough
CT: control target
= control target key end

     0   :  { %7 = vsyncpa [#allocation3], 0  ;;  %s2050_s0 = inlined_call_operand.hbm [shape: s32[512,128], index: 0, kind: input, shape index: {}]   ;;  %s2051_s1 = inlined_call_operand.hbm [shape: s32[1,128], index: 1, kind: input, shape index: {}]   ;;  %s2052_s2 = inlined_call_operand.hbm [shape: s32[512,128], index: 2, kind: output, shape index: {}]  }
   0x1   :  { %9 = vsyncpa [#allocation3 + $0x1], 0 }
   0x2   :  { %10 = vsyncpa [#allocation6], 0 }
   0x3   :  { %11 = vsyncpa [#allocation4], 0 }
   0x4   :  { %13 = vsyncpa [#allocation4 + $0x1], 0  ;;  %s1199_s9 = smov 0   ;;  %s1201_s10 = smov 0  }
   0x5   :  { %s1203_s11 = smov 0   ;;  %s1205_s12 = smov 0  }
   0x6 LB: > { %s1220_s13 = sadd.s32 4294967295, %s1174_s12   ;;  %s925_s14 = sadd.s32 4294967294, %s1174_s12   ;;  %s1174_s12 = sphi %s1205_s12, %s2084_s12   ;;  %s1170_s11 = sphi %s1203_s11, %s2083_s11   ;;  %s1166_s10 = sphi %s1201_s10, %s2082_s10   ;;  %s1162_s9 = sphi %s1199_s9, %s2081_s9  }
   0x7   : > { %s1224_s15 = sadd.s32 1, %s1174_s12   ;;  %s26_s16 = sadd.s32 1, %s1170_s11 }
   0x8   : > { %s23_s17 = ssub.s32 %s1174_s12, %s1224_s15  ;;  %p33_p0 = scmp.ne.s32.totalorder %s1170_s11, %s1166_s10 }
   0x9   : > { %p24_p1 = scmp.eq.s32.totalorder %s23_s17, 0  ;;  %p34_p2 = scmp.eq.s32.totalorder %s1174_s12, 0 }
   0xa   : > { %p39_p3 = scmp.ne.s32.totalorder %s1166_s10, %s1162_s9  ;;  %p40_p4 = scmp.eq.s32.totalorder %s1220_s13, 0 }
   0xb   : > { %s1236_s18 = scalar_select %p24_p1, %s1170_s11, %s26_s16  }
   0xc   : > { %p1238_p5 = por %p34_p2, %p33_p0  ;;  %p1244_p6 = por %p40_p4, %p39_p3 }
   0xd   : > { %p84_p7 = scmp.eq.s32.totalorder %s1220_s13, 1  ;;  %p90_p8 = scmp.eq.s32.totalorder %s925_s14, 1 }
   0xe   : > { %p926_p9 = scmp.ge.s32.totalorder %s1174_s12, 1  ;;  %p97_p10 = scmp.lt.s32.totalorder %s1174_s12, 3 }
   0xf   : > { %p1251_p11 = por %p84_p7, %p33_p0  ;;  %p1255_p12 = por %p90_p8, %p39_p3 }
  0x10   : > { %p1259_p13 = pnand %p926_p9, %p97_p10  ;;  %s109_s26 = sshll.u32 %s2051_s1, 4  ;;  %s110_s26 = int_to_ptr.hbm [resolvable:$true] %s109_s26 }
  0x11   : > { %s1176_s27 = smov [#allocation5]   ;;  %p964_p3 = scmp.lt.s32.totalorder %s1174_s12, 2 }
  0x12   : > { %p951_p1 = pneg %p1259_p13  ;;  %s111_s28 = sshll.u32 %s1176_s27, 4  ;;  %s112_s28 = int_to_ptr.vmem [resolvable:$true] %s111_s28 }
  0x13   : > { %s122_s29 = sand.u32 1, %s1170_s11   ;;  %p1275_p7 = pnand %p964_p3, %p1238_p5 }
  0x14   : > { %p952_p2 = pnand %p951_p1, %p40_p4  ;;  %s929_s3 = sshll.u32 %s122_s29, 8 }
  0x15   : > { %s941_s4 = sshll.u32 %s1174_s12, 8  ;;  %s126_s14 = scalar_lea.vmem [#allocation2], %s929_s3 }
  0x16   : > { %954 = dma.hbm_to_vmem [thread:$0]  (!%p952_p2), %s110_s26, 16, %s112_s28, [#allocation6]  }
  0x17   : > { %s131_s7 = scalar_lea.hbm %s2050_s0, %s941_s4  ;;  %s134_s16 = sshll.u32 %s126_s14, 4  ;;  %s135_s16 = int_to_ptr.vmem [resolvable:$true] %s134_s16 }
  0x18   : > { %s132_s8 = sshll.u32 %s131_s7, 4  ;;  %s123_s17 = scalar_lea.sflag [#allocation3], %s122_s29  ;;  %s133_s8 = int_to_ptr.hbm [resolvable:$true] %s132_s8 }
  0x19   : > { %s1074_s24 = sshra.s32 %s133_s8, 4  ;;  %p1078_p8 = pneg %p1275_p7  ;;  %s1075_s24 = int_to_ptr.hbm [resolvable:$true] %s1074_s24 }
  0x1a   : > { %s1076_s19 = scalar_lea.hbm %s1075_s24, 256  ;;  %s1081_s27 = scalar_lea.hbm %s2050_s0, 512 }
  0x1b   : > { %p1077_p5 = scmp.ne.s32.totalorder %s1075_s24, %s1076_s19  ;;  %p1082_p1 = scmp.lt.s32.totalorder %s1075_s24, %s2050_s0 }
  0x1c   : > { %p1083_p2 = scmp.lt.s32.totalorder %s1081_s27, %s1076_s19 }
  0x1d   : > { %p1079_p9 = pnand %p1078_p8, %p1077_p5 }
  0x1e   : > { %p1084_p3 = por %p1083_p2, %p1082_p1 }
  0x1f   : > { %p1080_p10 = pneg %p1079_p9 }
  0x21   : > { %p1085_p0 = pnand %p1084_p3, %p1080_p10 }
  0x23   : > { %1088 = shalt.err (!%p1085_p0)
}
  0x24   : > { %s1177_s29 = smov 128   ;;  %s1178_s3 = smov 8  }
  0x25   : > { %958 = dma.hbm_to_vmem [thread:$0]  (!%p1275_p7), %s133_s8, 4096, %s135_s16, %s123_s17, %s1177_s29, %s1177_s29, %s1178_s3  }
  0x26   : > { %146 = sbr.rel (%p1259_p13) target bundleno = 642 (0x282), region = 28 }
  0x2b   : > { %s1296_s5 = sand.u32 1, %s1166_s10  }
  0x2c   : > { %s933_s6 = sshll.u32 %s1296_s5, 8  ;;  %s149_s7 = scalar_lea.sflag [#allocation3], %s1296_s5 }
  0x2d   : > { %s1302_s14 = scalar_lea.vmem [#allocation2], %s933_s6 }
  0x2e   : > { %1149 = dma.done.wait (%p1244_p6), %s149_s7, 4096  }
  0x2f   : > { %1151 = vsyncadd (%p1244_p6), %s149_s7, 4294963200 }
  0x30   : > { %1153 = dma.done.wait (%p40_p4), [#allocation6], 16  }
  0x31   : > { %1155 = vsyncadd (%p40_p4), [#allocation6], 4294967280  ;;  %v1313_v0 = vld [vmem:[%s1302_s14 + $0x20] sm:$0xff]  ;;  %v1316_v1 = vld [vmem:[%s1302_s14 + $0x10] sm:$0xff]  ;;  %s1179_s20 = smov 1   ;;  %v1180_v18 = vmov 127  }
  0x32   : > { %v1319_v2 = vld [vmem:[%s1302_s14] sm:$0xff]  ;;  %221 = vrot.lane.b32.xlu2 %v1313_v0, %s1179_s20  ;;  %217 = vrot.lane.b32.xlu1 %v1316_v1, %s1179_s20  ;;  %v1328_v3 = vld [vmem:[%s1302_s14 + $0x28] sm:$0xff]  ;;  %v410_v62 = vadd.s32 1, %v1316_v1  ;;  %s1909_s23 = scalar_lea.vmem [#allocation7], %s933_s6  ;;  %s942_s30 = sshll.u32 %s1220_s13, 8 }
  0x33   : > { %213 = vrot.lane.b32.xlu0 %v1319_v2, %s1179_s20  ;;  %v1331_v4 = vld [vmem:[%s1302_s14 + $0x18] sm:$0xff]  ;;  %v1334_v5 = vld [vmem:[%s1302_s14 + $0x8] sm:$0xff]  ;;  %v1343_v6 = vld [vmem:[%s1302_s14 + $0x40] sm:$0xff]  ;;  %1007 = vset.pattern.permute.xlu2 %v1180_v18  ;;  %v408_v57 = vadd.s32 1, %v1319_v2  ;;  %s838_s17 = scalar_lea.hbm %s2052_s2, %s942_s30  ;;  %s839_s24 = sshll.u32 %s1909_s23, 4  ;;  %s840_s24 = int_to_ptr.vmem [resolvable:$true] %s839_s24 }
  0x34   : > { %v1346_v7 = vld [vmem:[%s1302_s14 + $0x38] sm:$0xff]  ;;  %v1349_v8 = vld [vmem:[%s1302_s14 + $0x30] sm:$0xff]  ;;  %v1364_v11 = vld [vmem:[%s1302_s14 + $0x48] sm:$0xff]  ;;  %1009 = vset.pattern.permute.xlu1 %v1180_v18  ;;  %1008 = vset.pattern.permute.xlu0 %v1180_v18  ;;  %v409_v58 = vadd.s32 1, %v1334_v5  ;;  %v411_v63 = vadd.s32 1, %v1331_v4  ;;  %v412_v18 = vadd.s32 1, %v1313_v0 }
  0x35   : > { %v1358_v9 = vld [vmem:[%s1302_s14 + $0x58] sm:$0xff]  ;;  %v1361_v10 = vld [vmem:[%s1302_s14 + $0x50] sm:$0xff]  ;;  %v1376_v13 = vld [vmem:[%s1302_s14 + $0x68] sm:$0xff]  ;;  %s841_s19 = sshll.u32 %s838_s17, 4  ;;  %s827_s25 = scalar_lea.sflag [#allocation4], %s1296_s5  ;;  %s842_s19 = int_to_ptr.hbm [resolvable:$true] %s841_s19 }
  0x36   : > { %v1373_v12 = vld [vmem:[%s1302_s14 + $0x70] sm:$0xff]  ;;  %v1379_v14 = vld [vmem:[%s1302_s14 + $0x60] sm:$0xff]  ;;  %v1388_v15 = vld [vmem:[%s1302_s14 + $0x88] sm:$0xff]  ;;  %s1118_s26 = sshra.s32 %s842_s19, 4  ;;  %s1124_s4 = scalar_lea.hbm %s2052_s2, 512  ;;  %s1119_s26 = int_to_ptr.hbm [resolvable:$true] %s1118_s26 }
  0x37   : > { %v1391_v16 = vld [vmem:[%s1302_s14 + $0x80] sm:$0xff]  ;;  %v1394_v17 = vld [vmem:[%s1302_s14 + $0x78] sm:$0xff]  ;;  %v1409_v21 = vld [vmem:[%s1302_s14 + $0x90] sm:$0xff]  ;;  %s1120_s27 = scalar_lea.hbm %s1119_s26, 256  ;;  %p1125_p0 = scmp.lt.s32.totalorder %s1119_s26, %s2052_s2 }
  0x38   : > { %v1403_v19 = vld [vmem:[%s1302_s14 + $0xa0] sm:$0xff]  ;;  %v1406_v20 = vld [vmem:[%s1302_s14 + $0x98] sm:$0xff]  ;;  %v1421_v23 = vld [vmem:[%s1302_s14 + $0xb0] sm:$0xff]  ;;  %p1121_p4 = scmp.ne.s32.totalorder %s1119_s26, %s1120_s27  ;;  %p1126_p7 = scmp.lt.s32.totalorder %s1124_s4, %s1120_s27 }
  0x39   : > { %v1418_v22 = vld [vmem:[%s1302_s14 + $0xb8] sm:$0xff]  ;;  %v1424_v24 = vld [vmem:[%s1302_s14 + $0xa8] sm:$0xff]  ;;  %v1433_v25 = vld [vmem:[%s1302_s14 + $0xd0] sm:$0xff] }
  0x3a   : > { %223 = vrot.lane.b32.xlu2 %v1328_v3, %s1179_s20  ;;  %219 = vrot.lane.b32.xlu1 %v1331_v4, %s1179_s20  ;;  %v1436_v26 = vld [vmem:[%s1302_s14 + $0xc8] sm:$0xff]  ;;  %v1439_v27 = vld [vmem:[%s1302_s14 + $0xc0] sm:$0xff]  ;;  %p1122_p6 = pnand %p1121_p4, %p1251_p11  ;;  %p1127_p5 = por %p1126_p7, %p1125_p0 }
  0x3b   : > { %215 = vrot.lane.b32.xlu0 %v1334_v5, %s1179_s20  ;;  %v1448_v28 = vld [vmem:[%s1302_s14 + $0xe8] sm:$0xff]  ;;  %v1451_v29 = vld [vmem:[%s1302_s14 + $0xe0] sm:$0xff]  ;;  %v1454_v30 = vld [vmem:[%s1302_s14 + $0xd8] sm:$0xff] }
  0x3c   : > { %v1463_v31 = vld [vmem:[%s1302_s14 + $0xf8] sm:$0xff]  ;;  %v1466_v32 = vld [vmem:[%s1302_s14 + $0xf0] sm:$0xff]  ;;  %p1123_p13 = pneg %p1122_p6 }
  0x3e   : > { %p1128_p8 = pnand %p1127_p5, %p1123_p13 }
  0x42   : > { %229 = vrot.lane.b32.xlu2 %v1343_v6, %s1179_s20  ;;  %227 = vrot.lane.b32.xlu1 %v1346_v7, %s1179_s20 }
  0x43   : > { %225 = vrot.lane.b32.xlu0 %v1349_v8, %s1179_s20 }
  0x4a   : > { %235 = vrot.lane.b32.xlu2 %v1358_v9, %s1179_s20  ;;  %233 = vrot.lane.b32.xlu1 %v1361_v10, %s1179_s20 }
  0x4b   : > { %231 = vrot.lane.b32.xlu0 %v1364_v11, %s1179_s20 }
  0x52   : > { %241 = vrot.lane.b32.xlu2 %v1373_v12, %s1179_s20  ;;  %239 = vrot.lane.b32.xlu1 %v1376_v13, %s1179_s20 }
  0x53   : > { %237 = vrot.lane.b32.xlu0 %v1379_v14, %s1179_s20 }
  0x5a   : > { %247 = vrot.lane.b32.xlu2 %v1388_v15, %s1179_s20  ;;  %245 = vrot.lane.b32.xlu1 %v1391_v16, %s1179_s20 }
  0x5b   : > { %243 = vrot.lane.b32.xlu0 %v1394_v17, %s1179_s20 }
  0x62   : > { %253 = vrot.lane.b32.xlu2 %v1403_v19, %s1179_s20  ;;  %251 = vrot.lane.b32.xlu1 %v1406_v20, %s1179_s20 }
  0x63   : > { %249 = vrot.lane.b32.xlu0 %v1409_v21, %s1179_s20 }
  0x6a   : > { %259 = vrot.lane.b32.xlu2 %v1418_v22, %s1179_s20  ;;  %257 = vrot.lane.b32.xlu1 %v1421_v23, %s1179_s20 }
  0x6b   : > { %255 = vrot.lane.b32.xlu0 %v1424_v24, %s1179_s20 }
  0x72   : > { %265 = vrot.lane.b32.xlu2 %v1433_v25, %s1179_s20  ;;  %263 = vrot.lane.b32.xlu1 %v1436_v26, %s1179_s20 }
  0x73   : > { %261 = vrot.lane.b32.xlu0 %v1439_v27, %s1179_s20 }
  0x7a   : > { %271 = vrot.lane.b32.xlu2 %v1448_v28, %s1179_s20  ;;  %269 = vrot.lane.b32.xlu1 %v1451_v29, %s1179_s20 }
  0x7b   : > { %267 = vrot.lane.b32.xlu0 %v1454_v30, %s1179_s20 }
  0x82   : > { %275 = vrot.lane.b32.xlu1 %v1463_v31, %s1179_s20  ;;  %281 = vperm.xlu2 %1007, %v1319_v2  }
  0x83   : > { %273 = vrot.lane.b32.xlu0 %v1466_v32, %s1179_s20 }
  0x8a   : > { %287 = vperm.xlu1 %1009, %v1316_v1   ;;  %290 = vperm.xlu2 %1007, %v1331_v4  }
  0x8b   : > { %284 = vperm.xlu0 %1008, %v1334_v5  }
  0x8c   : > { %v1476_v33 = vpop.permute.xlu2 %221 }
  0x92   : > { %293 = vperm.xlu1 %1009, %v1313_v0   ;;  %296 = vperm.xlu2 %1007, %v1328_v3  }
  0x93   : > { %299 = vperm.xlu0 %1008, %v1349_v8  }
  0x94   : > { %v1481_v34 = vpop.permute.xlu2 %223 }
  0x9a   : > { %302 = vperm.xlu1 %1009, %v1346_v7   ;;  %305 = vperm.xlu2 %1007, %v1343_v6  }
  0x9b   : > { %308 = vperm.xlu0 %1008, %v1364_v11  }
  0x9c   : > { %v1486_v35 = vpop.permute.xlu2 %229 }
  0xa2   : > { %311 = vperm.xlu1 %1009, %v1361_v10   ;;  %314 = vperm.xlu2 %1007, %v1358_v9  }
  0xa3   : > { %317 = vperm.xlu0 %1008, %v1379_v14  }
  0xa4   : > { %v1491_v36 = vpop.permute.xlu2 %235  ;;  %v1493_v37 = vpop.permute.xlu1 %217 }
  0xa5   : > { %v1495_v38 = vpop.permute.xlu0 %213 }
  0xaa   : > { %320 = vperm.xlu1 %1009, %v1376_v13   ;;  %323 = vperm.xlu2 %1007, %v1373_v12  }
  0xab   : > { %326 = vperm.xlu0 %1008, %v1394_v17  }
  0xac   : > { %v1500_v39 = vpop.permute.xlu2 %241  ;;  %v1502_v40 = vpop.permute.xlu1 %219 }
  0xad   : > { %v1504_v41 = vpop.permute.xlu0 %215 }
  0xb2   : > { %329 = vperm.xlu1 %1009, %v1391_v16   ;;  %332 = vperm.xlu2 %1007, %v1388_v15  }
  0xb3   : > { %335 = vperm.xlu0 %1008, %v1409_v21  }
  0xb4   : > { %v1509_v42 = vpop.permute.xlu2 %247  ;;  %v1511_v43 = vpop.permute.xlu1 %227 }
  0xb5   : > { %v1513_v44 = vpop.permute.xlu0 %225 }
  0xba   : > { %338 = vperm.xlu1 %1009, %v1406_v20   ;;  %341 = vperm.xlu2 %1007, %v1403_v19  }
  0xbb   : > { %344 = vperm.xlu0 %1008, %v1424_v24  }
  0xbc   : > { %v1518_v45 = vpop.permute.xlu2 %253  ;;  %v1520_v46 = vpop.permute.xlu1 %233 }
  0xbd   : > { %2061 = vst [vmem:[#allocation11_spill] sm:$0xff] %v1518_v45  ;;  %v1522_v47 = vpop.permute.xlu0 %231 }
  0xc2   : > { %347 = vperm.xlu1 %1009, %v1421_v23   ;;  %350 = vperm.xlu2 %1007, %v1418_v22  }
  0xc3   : > { %353 = vperm.xlu0 %1008, %v1439_v27  }
  0xc4   : > { %v1527_v48 = vpop.permute.xlu2 %259  ;;  %v1529_v49 = vpop.permute.xlu1 %239 }
  0xc5   : > { %2062 = vst [vmem:[#allocation12_spill] sm:$0xff] %v1527_v48  ;;  %v1531_v50 = vpop.permute.xlu0 %237  ;;  %v414_v48 = vadd.s32 1, %v1349_v8 }
  0xca   : > { %356 = vperm.xlu1 %1009, %v1436_v26   ;;  %359 = vperm.xlu2 %1007, %v1433_v25  }
  0xcb   : > { %362 = vperm.xlu0 %1008, %v1454_v30  }
  0xcc   : > { %v1536_v51 = vpop.permute.xlu2 %265  ;;  %v1538_v52 = vpop.permute.xlu1 %245 }
  0xcd   : > { %v1540_v53 = vpop.permute.xlu0 %243 }
  0xd2   : > { %365 = vperm.xlu1 %1009, %v1451_v29   ;;  %368 = vperm.xlu2 %1007, %v1448_v28  }
  0xd3   : > { %371 = vperm.xlu0 %1008, %v1466_v32  }
  0xd4   : > { %v1545_v54 = vpop.permute.xlu2 %271  ;;  %v1547_v55 = vpop.permute.xlu1 %251 }
  0xd5   : > { %2063 = vst [vmem:[#allocation13_spill] sm:$0xff] %v1547_v55  ;;  %v1549_v56 = vpop.permute.xlu0 %249 }
  0xda   : > { %374 = vperm.xlu1 %1009, %v1463_v31   ;;  %441 = vperm.xlu2 %1007, %v408_v57  }
  0xdb   : > { %444 = vperm.xlu0 %1008, %v409_v58   ;;  %v413_v58 = vadd.s32 1, %v1328_v3 }
  0xdc   : > { %v1554_v59 = vpop.permute.xlu1 %257  ;;  %v1556_v60 = vpop.permute.xlu2 %281 }
  0xdd   : > { %v1558_v61 = vpop.permute.xlu0 %255 }
  0xde   : > { %2064 = vst [vmem:[#allocation14_spill] sm:$0xff] %v1558_v61  ;;  %v415_v61 = vadd.s32 1, %v1346_v7 }
  0xe2   : > { %447 = vperm.xlu1 %1009, %v410_v62   ;;  %450 = vperm.xlu2 %1007, %v411_v63   ;;  %v416_v62 = vadd.s32 1, %v1343_v6  ;;  %v417_v63 = vadd.s32 1, %v1364_v11 }
  0xe3   : > { %453 = vperm.xlu0 %1008, %v412_v18   ;;  %v418_v18 = vadd.s32 1, %v1361_v10 }
  0xe4   : > { %v1563_v2 = vpop.permute.xlu1 %263  ;;  %v1565_v5 = vpop.permute.xlu2 %290 }
  0xe5   : > { %2065 = vst [vmem:[#allocation15_spill] sm:$0xff] %v1563_v2  ;;  %v1567_v57 = vpop.permute.xlu0 %261 }
  0xea   : > { %456 = vperm.xlu1 %1009, %v413_v58   ;;  %459 = vperm.xlu2 %1007, %v414_v48   ;;  %v419_v48 = vadd.s32 1, %v1358_v9  ;;  %v421_v58 = vadd.s32 1, %v1376_v13 }
  0xeb   : > { %462 = vperm.xlu0 %1008, %v415_v61   ;;  %v420_v61 = vadd.s32 1, %v1379_v14 }
  0xec   : > { %v1572_v1 = vpop.permute.xlu1 %269  ;;  %v1574_v0 = vpop.permute.xlu2 %296 }
  0xed   : > { %v1576_v4 = vpop.permute.xlu0 %267 }
  0xf2   : > { %465 = vperm.xlu1 %1009, %v416_v62   ;;  %468 = vperm.xlu2 %1007, %v417_v63   ;;  %v422_v62 = vadd.s32 1, %v1373_v12  ;;  %v423_v63 = vadd.s32 1, %v1394_v17 }
  0xf3   : > { %471 = vperm.xlu0 %1008, %v418_v18   ;;  %v424_v18 = vadd.s32 1, %v1391_v16 }
  0xf4   : > { %v1581_v3 = vpop.permute.xlu1 %275  ;;  %v1583_v7 = vpop.permute.xlu2 %305 }
  0xf5   : > { %v1585_v8 = vpop.permute.xlu0 %273 }
  0xfa   : > { %474 = vperm.xlu1 %1009, %v419_v48   ;;  %477 = vperm.xlu2 %1007, %v420_v61   ;;  %v425_v48 = vadd.s32 1, %v1388_v15  ;;  %v426_v61 = vadd.s32 1, %v1409_v21 }
  0xfb   : > { %480 = vperm.xlu0 %1008, %v421_v58   ;;  %v427_v58 = vadd.s32 1, %v1406_v20 }
  0xfc   : > { %v1590_v6 = vpop.permute.xlu1 %287  ;;  %v1592_v10 = vpop.permute.xlu2 %314 }
  0xfd   : > { %v1594_v11 = vpop.permute.xlu0 %284 }
 0x102   : > { %483 = vperm.xlu1 %1009, %v422_v62   ;;  %486 = vperm.xlu2 %1007, %v423_v63   ;;  %v428_v62 = vadd.s32 1, %v1403_v19  ;;  %v429_v63 = vadd.s32 1, %v1424_v24 }
 0x103   : > { %489 = vperm.xlu0 %1008, %v424_v18   ;;  %v430_v18 = vadd.s32 1, %v1421_v23 }
 0x104   : > { %v1599_v9 = vpop.permute.xlu1 %293  ;;  %v1601_v13 = vpop.permute.xlu2 %323 }
 0x105   : > { %v1603_v14 = vpop.permute.xlu0 %299 }
 0x10a   : > { %492 = vperm.xlu1 %1009, %v425_v48   ;;  %495 = vperm.xlu2 %1007, %v426_v61   ;;  %v431_v48 = vadd.s32 1, %v1418_v22  ;;  %v432_v61 = vadd.s32 1, %v1439_v27 }
 0x10b   : > { %498 = vperm.xlu0 %1008, %v427_v58   ;;  %v433_v58 = vadd.s32 1, %v1436_v26 }
 0x10c   : > { %v1608_v12 = vpop.permute.xlu1 %302  ;;  %v1610_v16 = vpop.permute.xlu2 %332 }
 0x10d   : > { %v1612_v17 = vpop.permute.xlu0 %308 }
 0x112   : > { %501 = vperm.xlu1 %1009, %v428_v62   ;;  %504 = vperm.xlu2 %1007, %v429_v63   ;;  %v434_v62 = vadd.s32 1, %v1433_v25  ;;  %v435_v63 = vadd.s32 1, %v1454_v30 }
 0x113   : > { %507 = vperm.xlu0 %1008, %v430_v18   ;;  %v436_v18 = vadd.s32 1, %v1451_v29 }
 0x114   : > { %v1617_v15 = vpop.permute.xlu1 %311  ;;  %v1619_v20 = vpop.permute.xlu2 %341 }
 0x115   : > { %v1621_v21 = vpop.permute.xlu0 %317 }
 0x11a   : > { %510 = vperm.xlu1 %1009, %v431_v48   ;;  %513 = vperm.xlu2 %1007, %v432_v61   ;;  %v437_v48 = vadd.s32 1, %v1448_v28  ;;  %v438_v61 = vadd.s32 1, %v1466_v32 }
 0x11b   : > { %516 = vperm.xlu0 %1008, %v433_v58   ;;  %v439_v58 = vadd.s32 1, %v1463_v31  ;;  %v2053_v31 = vmov 0  }
 0x11c   : > { %v1626_v19 = vpop.permute.xlu1 %320  ;;  %v1628_v23 = vpop.permute.xlu2 %350 }
 0x11d   : > { %2066 = vst [vmem:[#allocation16_spill] sm:$0xff] %v1628_v23  ;;  %v1630_v24 = vpop.permute.xlu0 %326 }
 0x122   : > { %519 = vperm.xlu1 %1009, %v434_v62   ;;  %522 = vperm.xlu2 %1007, %v435_v63   ;;  %v277_v62 = vlaneseq }
 0x123   : > { %525 = vperm.xlu0 %1008, %v436_v18  }
 0x124   : > { %v1635_v22 = vpop.permute.xlu1 %329  ;;  %v1637_v26 = vpop.permute.xlu2 %359  ;;  %v1650_v63 = vand.u32 127, %v277_v62 }
 0x125   : > { %v1639_v27 = vpop.permute.xlu0 %335 }
 0x126   : > { %vm279_vm0 = vcmp.eq.s32.totalorder %v1650_v63, 0  ;;  %vm376_vm2 = vcmp.le.s32.totalorder %v1650_v63, %v1556_v60  ;;  %vm379_vm4 = vcmp.le.s32.totalorder %v1650_v63, %v1565_v5  ;;  %vm377_vm6 = vcmp.le.s32.totalorder %v1650_v63, %v1594_v11 }
 0x127   : > { %vm378_vm8 = vcmp.le.s32.totalorder %v1650_v63, %v1590_v6  ;;  %vm380_vm10 = vcmp.le.s32.totalorder %v1650_v63, %v1599_v9  ;;  %vm381_vm12 = vcmp.le.s32.totalorder %v1650_v63, %v1574_v0  ;;  %vm383_vm14 = vcmp.le.s32.totalorder %v1650_v63, %v1608_v12 }
 0x12a   : > { %528 = vperm.xlu1 %1009, %v437_v48   ;;  %531 = vperm.xlu2 %1007, %v438_v61  }
 0x12b   : > { %534 = vperm.xlu0 %1008, %v439_v58  }
 0x12c   : > { %v1644_v25 = vpop.permute.xlu1 %338  ;;  %v1646_v29 = vpop.permute.xlu2 %368 }
 0x12d   : > { %2067 = vst [vmem:[#allocation17_spill] sm:$0xff] %v1644_v25  ;;  %v1648_v30 = vpop.permute.xlu0 %344 }
 0x12e   : > { %2068 = vst [vmem:[#allocation18_spill] sm:$0xff] %v1648_v30 }
 0x134   : > { %v1652_v18 = vpop.permute.xlu1 %347  ;;  %v442_v2 = vpop.permute.xlu2 %441 }
 0x135   : > { %v1654_v28 = vpop.permute.xlu0 %353  ;;  %vm536_vm1 = vcmp.eq.s32.totalorder %v1650_v63, %v442_v2  ;;  %v1669_v2 = vld [vmem:[#allocation5] ss:$0 sm:$0xff] }
 0x136   : > { %v568_v32 = vsel %vm536_vm1, 2, %v2053_v31 }
 0x137   : > { %v600_v48 = vsel %vm376_vm2, %v1495_v38, %v568_v32  ;;  %vm384_vm2 = vcmp.le.s32.totalorder %v1650_v63, %v1583_v7 }
 0x138   : > { %v632_v61 = vsel %vm279_vm0, 1, %v600_v48 }
 0x139   : > { %v664_v58 = vand.u32 127, %v632_v61 }
 0x13b   : > { %1010 = vset.pattern.permute.xlu1 %v664_v58 }
 0x13c   : > { %v1664_v62 = vpop.permute.xlu1 %356  ;;  %v451_v30 = vpop.permute.xlu2 %450 }
 0x13d   : > { %2069 = vst [vmem:[#allocation19_spill] sm:$0xff] %v1664_v62  ;;  %v1666_v23 = vpop.permute.xlu0 %362  ;;  %vm539_vm3 = vcmp.eq.s32.totalorder %v1650_v63, %v451_v30 }
 0x13e   : > { %v571_v60 = vsel %vm539_vm3, 2, %v2053_v31  ;;  %vm382_vm3 = vcmp.le.s32.totalorder %v1650_v63, %v1603_v14 }
 0x13f   : > { %v603_v38 = vsel %vm379_vm4, %v1502_v40, %v571_v60  ;;  %v2070_v40 = vmov 0  }
 0x140   : > { %v635_v58 = vsel %vm279_vm0, 1, %v603_v38 }
 0x141   : > { %v667_v30 = vand.u32 127, %v635_v58 }
 0x143   : > { %699 = vperm.xlu1 %1010, %v1669_v2  }
 0x144   : > { %v1676_v32 = vpop.permute.xlu1 %365  ;;  %v460_v48 = vpop.permute.xlu2 %459 }
 0x145   : > { %v1678_v61 = vpop.permute.xlu0 %371  ;;  %vm542_vm1 = vcmp.eq.s32.totalorder %v1650_v63, %v460_v48 }
 0x14b   : > { %1013 = vset.pattern.permute.xlu1 %v667_v30 }
 0x14c   : > { %v1682_v62 = vpop.permute.xlu1 %374  ;;  %v1684_v31 = vpop.permute.xlu2 %468 }
 0x14d   : > { %v445_v55 = vpop.permute.xlu0 %444 }
 0x14e   : > { %vm537_vm5 = vcmp.eq.s32.totalorder %v1650_v63, %v445_v55 }
 0x14f   : > { %v569_v5 = vsel %vm537_vm5, 2, %v2070_v40  ;;  %vm388_vm5 = vcmp.le.s32.totalorder %v1650_v63, %v1621_v21 }
 0x150   : > { %v601_v60 = vsel %vm377_vm6, %v1504_v41, %v569_v5 }
 0x151   : > { %v633_v45 = vsel %vm279_vm0, 1, %v601_v60 }
 0x152   : > { %v665_v38 = vand.u32 127, %v633_v45 }
 0x153   : > { %708 = vperm.xlu1 %1013, %v1669_v2  }
 0x154   : > { %1011 = vset.pattern.permute.xlu2 %v665_v38  ;;  %v448_v58 = vpop.permute.xlu1 %447  ;;  %v478_v30 = vpop.permute.xlu2 %477 }
 0x155   : > { %vm538_vm7 = vcmp.eq.s32.totalorder %v1650_v63, %v448_v58  ;;  %v454_v25 = vpop.permute.xlu0 %453  ;;  %vm548_vm4 = vcmp.eq.s32.totalorder %v1650_v63, %v478_v30 }
 0x156   : > { %v570_v55 = vsel %vm538_vm7, 2, %v2070_v40  ;;  %vm540_vm9 = vcmp.eq.s32.totalorder %v1650_v63, %v454_v25 }
 0x157   : > { %v602_v41 = vsel %vm378_vm8, %v1493_v37, %v570_v55  ;;  %v572_v5 = vsel %vm540_vm9, 2, %v2070_v40  ;;  %vm400_vm8 = vcmp.le.s32.totalorder %v1650_v63, %v1654_v28  ;;  %vm545_vm9 = vcmp.eq.s32.totalorder %v1650_v63, %v1684_v31 }
 0x158   : > { %v634_v45 = vsel %vm279_vm0, 1, %v602_v41  ;;  %v604_v60 = vsel %vm380_vm10, %v1476_v33, %v572_v5  ;;  %vm386_vm10 = vcmp.le.s32.totalorder %v1650_v63, %v1617_v15 }
 0x159   : > { %v666_v11 = vand.u32 127, %v634_v45  ;;  %v636_v33 = vsel %vm279_vm0, 1, %v604_v60 }
 0x15a   : > { %v668_v45 = vand.u32 127, %v636_v33 }
 0x15b   : > { %1012 = vset.pattern.permute.xlu0 %v666_v11 }
 0x15c   : > { %702 = vperm.xlu2 %1011, %v1669_v2   ;;  %v457_v6 = vpop.permute.xlu1 %456  ;;  %v1707_v38 = vpop.permute.xlu2 %486 }
 0x15d   : > { %vm541_vm11 = vcmp.eq.s32.totalorder %v1650_v63, %v457_v6  ;;  %v463_v37 = vpop.permute.xlu0 %462  ;;  %v574_v6 = vsel %vm542_vm1, 2, %v2070_v40  ;;  %vm406_vm1 = vcmp.le.s32.totalorder %v1650_v63, %v1678_v61 }
 0x15e   : > { %v573_v25 = vsel %vm541_vm11, 2, %v2070_v40  ;;  %vm543_vm13 = vcmp.eq.s32.totalorder %v1650_v63, %v463_v37  ;;  %v606_v48 = vsel %vm382_vm3, %v1513_v44, %v574_v6  ;;  %vm385_vm11 = vcmp.le.s32.totalorder %v1650_v63, %v1612_v17 }
 0x15f   : > { %v605_v9 = vsel %vm381_vm12, %v1481_v34, %v573_v25  ;;  %v575_v58 = vsel %vm543_vm13, 2, %v2070_v40  ;;  %v638_v14 = vsel %vm279_vm0, 1, %v606_v48  ;;  %vm393_vm13 = vcmp.le.s32.totalorder %v1650_v63, %v1610_v16 }
 0x160   : > { %v637_v55 = vsel %vm279_vm0, 1, %v605_v9  ;;  %v607_v0 = vsel %vm383_vm14, %v1511_v43, %v575_v58  ;;  %v670_v44 = vand.u32 127, %v638_v14  ;;  %vm389_vm3 = vcmp.le.s32.totalorder %v1650_v63, %v1626_v19 }
 0x161   : > { %v669_v41 = vand.u32 127, %v637_v55  ;;  %v639_v60 = vsel %vm279_vm0, 1, %v607_v0 }
 0x162   : > { %v671_v43 = vand.u32 127, %v639_v60 }
 0x163   : > { %705 = vperm.xlu0 %1012, %v1669_v2   ;;  %1015 = vset.pattern.permute.xlu1 %v669_v41 }
 0x164   : > { %1014 = vset.pattern.permute.xlu2 %v668_v45  ;;  %v466_v34 = vpop.permute.xlu1 %465  ;;  %v1724_v11 = vpop.permute.xlu2 %495 }
 0x165   : > { %vm544_vm15 = vcmp.eq.s32.totalorder %v1650_v63, %v466_v34  ;;  %v472_v5 = vpop.permute.xlu0 %471 }
 0x166   : > { %v576_v12 = vsel %vm544_vm15, 2, %v2070_v40  ;;  %vm546_vm6 = vcmp.eq.s32.totalorder %v1650_v63, %v472_v5  ;;  %v577_v5 = vsel %vm545_vm9, 2, %v2070_v40 }
 0x167   : > { %v608_v37 = vsel %vm384_vm2, %v1486_v35, %v576_v12  ;;  %v580_v35 = vsel %vm548_vm4, 2, %v2070_v40  ;;  %v578_v34 = vsel %vm546_vm6, 2, %v2070_v40  ;;  %v609_v31 = vsel %vm385_vm11, %v1522_v47, %v577_v5 }
 0x168   : > { %v640_v7 = vsel %vm279_vm0, 1, %v608_v37  ;;  %v612_v55 = vsel %vm388_vm5, %v1531_v50, %v580_v35  ;;  %v610_v28 = vsel %vm386_vm10, %v1520_v46, %v578_v34  ;;  %v641_v46 = vsel %vm279_vm0, 1, %v609_v31 }
 0x169   : > { %v672_v58 = vand.u32 127, %v640_v7  ;;  %v644_v21 = vsel %vm279_vm0, 1, %v612_v55  ;;  %v642_v15 = vsel %vm279_vm0, 1, %v610_v28  ;;  %v673_v47 = vand.u32 127, %v641_v46 }
 0x16a   : > { %v676_v60 = vand.u32 127, %v644_v21  ;;  %vm387_vm4 = vcmp.le.s32.totalorder %v1650_v63, %v1592_v10  ;;  %vm398_vm6 = vcmp.le.s32.totalorder %v1650_v63, %v1652_v18 }
 0x16b   : > { %1017 = vset.pattern.permute.xlu0 %v671_v43  ;;  %714 = vperm.xlu1 %1015, %v1669_v2   ;;  %v674_v43 = vand.u32 127, %v642_v15 }
 0x16c   : > { %711 = vperm.xlu2 %1014, %v1669_v2   ;;  %v475_v25 = vpop.permute.xlu1 %474  ;;  %v1740_v9 = vpop.permute.xlu2 %504 }
 0x16d   : > { %v481_v33 = vpop.permute.xlu0 %480  ;;  %vm547_vm2 = vcmp.eq.s32.totalorder %v1650_v63, %v475_v25 }
 0x16e   : > { %vm549_vm14 = vcmp.eq.s32.totalorder %v1650_v63, %v481_v33  ;;  %v579_v33 = vsel %vm547_vm2, 2, %v2070_v40  ;;  %vm405_vm2 = vcmp.le.s32.totalorder %v1650_v63, %v1646_v29 }
 0x16f   : > { %v611_v25 = vsel %vm387_vm4, %v1491_v36, %v579_v33  ;;  %vm554_vm4 = vcmp.eq.s32.totalorder %v1650_v63, %v1724_v11 }
 0x170   : > { %v643_v10 = vsel %vm279_vm0, 1, %v611_v25  ;;  %v586_v15 = vsel %vm554_vm4, 2, %v2070_v40 }
 0x171   : > { %v675_v36 = vand.u32 127, %v643_v10 }
 0x173   : > { %720 = vperm.xlu0 %1017, %v1669_v2   ;;  %1018 = vset.pattern.permute.xlu1 %v672_v58  ;;  %v581_v58 = vsel %vm549_vm14, 2, %v2070_v40  ;;  %vm390_vm14 = vcmp.le.s32.totalorder %v1650_v63, %v1601_v13 }
 0x174   : > { %1016 = vset.pattern.permute.xlu2 %v670_v44  ;;  %v1752_v30 = vpop.permute.xlu1 %483  ;;  %v514_v41 = vpop.permute.xlu2 %513  ;;  %v613_v61 = vsel %vm389_vm3, %v1529_v49, %v581_v58  ;;  %vm403_vm3 = vcmp.le.s32.totalorder %v1650_v63, %v1666_v23 }
 0x175   : > { %v1755_v45 = vpop.permute.xlu0 %489  ;;  %vm560_vm7 = vcmp.eq.s32.totalorder %v1650_v63, %v514_v41  ;;  %v645_v19 = vsel %vm279_vm0, 1, %v613_v61  ;;  %vm550_vm10 = vcmp.eq.s32.totalorder %v1650_v63, %v1752_v30 }
 0x176   : > { %v592_v50 = vsel %vm560_vm7, 2, %v2070_v40  ;;  %v677_v41 = vand.u32 127, %v645_v19  ;;  %vm402_vm7 = vcmp.le.s32.totalorder %v1650_v63, %v1637_v26  ;;  %v582_v30 = vsel %vm550_vm10, 2, %v2070_v40 }
 0x177   : > { %v1766_v0 = vsel %vm400_vm8, %v1567_v57, %v592_v50  ;;  %vm551_vm8 = vcmp.eq.s32.totalorder %v1650_v63, %v1707_v38 }
 0x178   : > { %v583_v5 = vsel %vm551_vm8, 2, %v2070_v40 }
 0x17b   : > { %723 = vperm.xlu1 %1018, %v1669_v2   ;;  %1022 = vset.pattern.permute.xlu0 %v676_v60 }
 0x17c   : > { %717 = vperm.xlu2 %1016, %v1669_v2   ;;  %v493_v57 = vpop.permute.xlu1 %492  ;;  %v1778_v12 = vpop.permute.xlu2 %522 }
 0x17d   : > { %vm553_vm12 = vcmp.eq.s32.totalorder %v1650_v63, %v493_v57  ;;  %v1781_v6 = vpop.permute.xlu0 %498 }
 0x17e   : > { %v585_v17 = vsel %vm553_vm12, 2, %v2070_v40  ;;  %vm404_vm12 = vcmp.le.s32.totalorder %v1650_v63, %v1676_v32 }
 0x17f   : > { %v617_v37 = vsel %vm393_vm13, %v1509_v42, %v585_v17  ;;  %vm391_vm13 = vcmp.le.s32.totalorder %v1650_v63, %v1630_v24 }
 0x180   : > { %v649_v42 = vsel %vm279_vm0, 1, %v617_v37  ;;  %v615_v32 = vsel %vm391_vm13, %v1540_v53, %v583_v5 }
 0x181   : > { %v681_v44 = vand.u32 127, %v649_v42  ;;  %v647_v53 = vsel %vm279_vm0, 1, %v615_v32  ;;  %v2073_v42 = vld [vmem:[#allocation13_spill] sm:$0xff]  ;;  %v2078_v32 = vld [vmem:[#allocation19_spill] sm:$0xff] }
 0x182   : > { %v679_v57 = vand.u32 127, %v647_v53  ;;  %vm401_vm4 = vcmp.le.s32.totalorder %v1650_v63, %v2078_v32 }
 0x183   : > { %1020 = vset.pattern.permute.xlu1 %v674_v43  ;;  %735 = vperm.xlu0 %1022, %v1669_v2  }
 0x184   : > { %1019 = vset.pattern.permute.xlu2 %v673_v47  ;;  %v1792_v48 = vpop.permute.xlu1 %501  ;;  %v532_v7 = vpop.permute.xlu2 %531 }
 0x185   : > { %v508_v14 = vpop.permute.xlu0 %507  ;;  %vm566_vm15 = vcmp.eq.s32.totalorder %v1650_v63, %v532_v7  ;;  %vm556_vm10 = vcmp.eq.s32.totalorder %v1650_v63, %v1792_v48 }
 0x186   : > { %v598_v16 = vsel %vm566_vm15, 2, %v2070_v40  ;;  %vm558_vm5 = vcmp.eq.s32.totalorder %v1650_v63, %v508_v14  ;;  %vm563_vm15 = vcmp.eq.s32.totalorder %v1650_v63, %v1778_v12  ;;  %v588_v37 = vsel %vm556_vm10, 2, %v2070_v40  ;;  %v2072_v14 = vld [vmem:[#allocation11_spill] sm:$0xff] }
 0x187   : > { %v1803_v35 = vsel %vm406_vm1, %v1585_v8, %v598_v16  ;;  %v590_v49 = vsel %vm558_vm5, 2, %v2070_v40  ;;  %v595_v31 = vsel %vm563_vm15, 2, %v2070_v40  ;;  %vm552_vm5 = vcmp.eq.s32.totalorder %v1650_v63, %v1755_v45 }
 0x188   : > { %v622_v50 = vsel %vm398_vm6, %v1554_v59, %v590_v49  ;;  %v627_v29 = vsel %vm403_vm3, %v1576_v4, %v595_v31  ;;  %v584_v23 = vsel %vm552_vm5, 2, %v2070_v40  ;;  %vm394_vm6 = vcmp.le.s32.totalorder %v1650_v63, %v1639_v27 }
 0x189   : > { %v654_v59 = vsel %vm279_vm0, 1, %v622_v50  ;;  %v618_v11 = vsel %vm394_vm6, %v1549_v56, %v586_v15  ;;  %vm557_vm15 = vcmp.eq.s32.totalorder %v1650_v63, %v1740_v9  ;;  %v2077_v9 = vld [vmem:[#allocation14_spill] sm:$0xff] }
 0x18a   : > { %v686_v28 = vand.u32 127, %v654_v59  ;;  %v650_v17 = vsel %vm279_vm0, 1, %v618_v11  ;;  %v589_v49 = vsel %vm557_vm15, 2, %v2070_v40 }
 0x18b   : > { %729 = vperm.xlu1 %1020, %v1669_v2   ;;  %1027 = vset.pattern.permute.xlu0 %v681_v44  ;;  %v682_v43 = vand.u32 127, %v650_v17 }
 0x18c   : > { %726 = vperm.xlu2 %1019, %v1669_v2   ;;  %v1815_v8 = vpop.permute.xlu1 %510 }
 0x18d   : > { %v1818_v55 = vpop.permute.xlu0 %516 }
 0x18e   : > { %vm561_vm3 = vcmp.eq.s32.totalorder %v1650_v63, %v1818_v55 }
 0x193   : > { %1023 = vset.pattern.permute.xlu1 %v677_v41  ;;  %750 = vperm.xlu0 %1027, %v1669_v2   ;;  %v2074_v41 = vld [vmem:[#allocation16_spill] sm:$0xff] }
 0x194   : > { %1021 = vset.pattern.permute.xlu2 %v675_v36  ;;  %v520_v21 = vpop.permute.xlu1 %519  ;;  %v2075_v36 = vld [vmem:[#allocation18_spill] sm:$0xff] }
 0x195   : > { %vm562_vm9 = vcmp.eq.s32.totalorder %v1650_v63, %v520_v21  ;;  %v526_v34 = vpop.permute.xlu0 %525 }
 0x196   : > { %v594_v18 = vsel %vm562_vm9, 2, %v2070_v40  ;;  %vm564_vm11 = vcmp.eq.s32.totalorder %v1650_v63, %v526_v34  ;;  %vm407_vm9 = vcmp.le.s32.totalorder %v1650_v63, %v1682_v62 }
 0x197   : > { %v1843_v26 = vsel %vm402_vm7, %v1536_v51, %v594_v18  ;;  %v596_v38 = vsel %vm564_vm11, 2, %v2070_v40  ;;  %v614_v51 = vsel %vm390_vm14, %v1500_v39, %v582_v30  ;;  %vm392_vm7 = vcmp.le.s32.totalorder %v1650_v63, %v1635_v22 }
 0x198   : > { %v1848_v60 = vsel %vm404_vm12, %v1572_v1, %v596_v38  ;;  %v646_v39 = vsel %vm279_vm0, 1, %v614_v51  ;;  %v616_v45 = vsel %vm392_vm7, %v1538_v52, %v584_v23  ;;  %vm555_vm11 = vcmp.eq.s32.totalorder %v1650_v63, %v1781_v6  ;;  %v2071_v6 = vld [vmem:[#allocation17_spill] sm:$0xff]  ;;  %v2079_v51 = vld [vmem:[#allocation15_spill] sm:$0xff] }
 0x199   : > { %v678_v12 = vand.u32 127, %v646_v39  ;;  %v648_v27 = vsel %vm279_vm0, 1, %v616_v45  ;;  %v587_v48 = vsel %vm555_vm11, 2, %v2070_v40  ;;  %vm396_vm12 = vcmp.le.s32.totalorder %v1650_v63, %v1619_v20 }
 0x19a   : > { %v680_v56 = vand.u32 127, %v648_v27  ;;  %vm395_vm13 = vcmp.le.s32.totalorder %v1650_v63, %v2071_v6  ;;  %v620_v16 = vsel %vm396_vm12, %v2072_v14, %v588_v37  ;;  %vm559_vm14 = vcmp.eq.s32.totalorder %v1650_v63, %v1815_v8  ;;  %v2076_v8 = vld [vmem:[#allocation12_spill] sm:$0xff] }
 0x19b   : > { %738 = vperm.xlu1 %1023, %v1669_v2   ;;  %1032 = vset.pattern.permute.xlu0 %v686_v28  ;;  %v619_v58 = vsel %vm395_vm13, %v2073_v42, %v587_v48  ;;  %v652_v33 = vsel %vm279_vm0, 1, %v620_v16  ;;  %v591_v10 = vsel %vm559_vm14, 2, %v2070_v40  ;;  %v593_v28 = vsel %vm561_vm3, 2, %v2070_v40 }
 0x19c   : > { %732 = vperm.xlu2 %1021, %v1669_v2   ;;  %v529_v1 = vpop.permute.xlu1 %528  ;;  %v651_v20 = vsel %vm279_vm0, 1, %v619_v58  ;;  %v684_v44 = vand.u32 127, %v652_v33 }
 0x19d   : > { %vm565_vm1 = vcmp.eq.s32.totalorder %v1650_v63, %v529_v1  ;;  %v535_v4 = vpop.permute.xlu0 %534  ;;  %v683_v61 = vand.u32 127, %v651_v20  ;;  %v625_v1 = vsel %vm401_vm4, %v2079_v51, %v593_v28 }
 0x19e   : > { %v597_v13 = vsel %vm565_vm1, 2, %v2070_v40  ;;  %vm567_vm8 = vcmp.eq.s32.totalorder %v1650_v63, %v535_v4  ;;  %vm399_vm1 = vcmp.le.s32.totalorder %v1650_v63, %v2074_v41  ;;  %v657_v55 = vsel %vm279_vm0, 1, %v625_v1 }
 0x19f   : > { %v1868_v24 = vsel %vm405_vm2, %v1545_v54, %v597_v13  ;;  %v659_v54 = vsel %vm279_vm0, 1, %v627_v29  ;;  %v599_v22 = vsel %vm567_vm8, 2, %v2070_v40  ;;  %vm397_vm2 = vcmp.le.s32.totalorder %v1650_v63, %v2075_v36 }
 0x1a0   : > { %v691_v46 = vand.u32 127, %v659_v54  ;;  %v631_v52 = vsel %vm407_vm9, %v1581_v3, %v599_v22  ;;  %v623_v50 = vsel %vm399_vm1, %v2076_v8, %v591_v10  ;;  %v621_v21 = vsel %vm397_vm2, %v2077_v9, %v589_v49 }
 0x1a1   : > { %v1914_v3 = vsel %vm279_vm0, 1, %v631_v52  ;;  %v655_v34 = vsel %vm279_vm0, 1, %v623_v50  ;;  %v653_v18 = vsel %vm279_vm0, 1, %v621_v21  ;;  %v656_v40 = vsel %vm279_vm0, 1, %v1766_v0 }
 0x1a2   : > { %v695_v7 = vand.u32 127, %v1914_v3  ;;  %v687_v59 = vand.u32 127, %v655_v34  ;;  %v685_v38 = vand.u32 127, %v653_v18  ;;  %v689_v53 = vand.u32 127, %v657_v55 }
 0x1a3   : > { %765 = vperm.xlu0 %1032, %v1669_v2   ;;  %1025 = vset.pattern.permute.xlu1 %v679_v57  ;;  %v688_v39 = vand.u32 127, %v656_v40  ;;  %v660_v0 = vsel %vm279_vm0, 1, %v1848_v60  ;;  %v658_v29 = vsel %vm279_vm0, 1, %v1843_v26  ;;  %v662_v26 = vsel %vm279_vm0, 1, %v1803_v35 }
 0x1a4   : > { %1024 = vset.pattern.permute.xlu2 %v678_v12  ;;  %v692_v54 = vand.u32 127, %v660_v0  ;;  %v690_v15 = vand.u32 127, %v658_v29  ;;  %v661_v4 = vsel %vm279_vm0, 1, %v1868_v24  ;;  %v694_v11 = vand.u32 127, %v662_v26 }
 0x1a5   : > { %v693_v45 = vand.u32 127, %v661_v4 }
 0x1ab   : > { %744 = vperm.xlu1 %1025, %v1669_v2   ;;  %1037 = vset.pattern.permute.xlu0 %v691_v46 }
 0x1ac   : > { %741 = vperm.xlu2 %1024, %v1669_v2  }
 0x1b3   : > { %1028 = vset.pattern.permute.xlu1 %v682_v43  ;;  %780 = vperm.xlu0 %1037, %v1669_v2  }
 0x1b4   : > { %1026 = vset.pattern.permute.xlu2 %v680_v56 }
 0x1b5   : > { %v700_v47 = vpop.permute.xlu1 %699 }
 0x1b6   : > { %794 = vst [vmem:[%s1909_s23] sm:$0xff] %v700_v47  ;;  %v703_v62 = vpop.permute.xlu2 %702 }
 0x1b7   : > { %795 = vst [vmem:[%s1909_s23 + $0x8] sm:$0xff] %v703_v62 }
 0x1bb   : > { %753 = vperm.xlu1 %1028, %v1669_v2   ;;  %1042 = vset.pattern.permute.xlu0 %v695_v7 }
 0x1bc   : > { %747 = vperm.xlu2 %1026, %v1669_v2  }
 0x1c3   : > { %1030 = vset.pattern.permute.xlu1 %v684_v44 }
 0x1c4   : > { %1029 = vset.pattern.permute.xlu2 %v683_v61 }
 0x1c5   : > { %v709_v25 = vpop.permute.xlu1 %708 }
 0x1c6   : > { %797 = vst [vmem:[%s1909_s23 + $0x18] sm:$0xff] %v709_v25  ;;  %v712_v19 = vpop.permute.xlu2 %711 }
 0x1c7   : > { %798 = vst [vmem:[%s1909_s23 + $0x20] sm:$0xff] %v712_v19 }
 0x1cb   : > { %759 = vperm.xlu1 %1030, %v1669_v2  }
 0x1cc   : > { %756 = vperm.xlu2 %1029, %v1669_v2  }
 0x1d3   : > { %1033 = vset.pattern.permute.xlu1 %v687_v59 }
 0x1d4   : > { %1031 = vset.pattern.permute.xlu2 %v685_v38 }
 0x1d5   : > { %v706_v5 = vpop.permute.xlu0 %705 }
 0x1d6   : > { %796 = vst [vmem:[%s1909_s23 + $0x10] sm:$0xff] %v706_v5  ;;  %v718_v30 = vpop.permute.xlu2 %717 }
 0x1d7   : > { %800 = vst [vmem:[%s1909_s23 + $0x30] sm:$0xff] %v718_v30 }
 0x1db   : > { %768 = vperm.xlu1 %1033, %v1669_v2  }
 0x1dc   : > { %762 = vperm.xlu2 %1031, %v1669_v2  }
 0x1dd   : > { %v715_v13 = vpop.permute.xlu1 %714 }
 0x1de   : > { %799 = vst [vmem:[%s1909_s23 + $0x28] sm:$0xff] %v715_v13 }
 0x1e3   : > { %1035 = vset.pattern.permute.xlu1 %v689_v53 }
 0x1e4   : > { %1034 = vset.pattern.permute.xlu2 %v688_v39 }
 0x1e5   : > { %v721_v31 = vpop.permute.xlu0 %720 }
 0x1e6   : > { %801 = vst [vmem:[%s1909_s23 + $0x38] sm:$0xff] %v721_v31  ;;  %v727_v57 = vpop.permute.xlu2 %726 }
 0x1e7   : > { %803 = vst [vmem:[%s1909_s23 + $0x48] sm:$0xff] %v727_v57 }
 0x1eb   : > { %774 = vperm.xlu1 %1035, %v1669_v2  }
 0x1ec   : > { %771 = vperm.xlu2 %1034, %v1669_v2  }
 0x1ed   : > { %v724_v12 = vpop.permute.xlu1 %723 }
 0x1ee   : > { %802 = vst [vmem:[%s1909_s23 + $0x40] sm:$0xff] %v724_v12 }
 0x1f3   : > { %1038 = vset.pattern.permute.xlu1 %v692_v54 }
 0x1f4   : > { %1036 = vset.pattern.permute.xlu2 %v690_v15 }
 0x1f5   : > { %v736_v23 = vpop.permute.xlu0 %735 }
 0x1f6   : > { %806 = vst [vmem:[%s1909_s23 + $0x60] sm:$0xff] %v736_v23  ;;  %v733_v46 = vpop.permute.xlu2 %732 }
 0x1f7   : > { %805 = vst [vmem:[%s1909_s23 + $0x58] sm:$0xff] %v733_v46 }
 0x1fb   : > { %783 = vperm.xlu1 %1038, %v1669_v2  }
 0x1fc   : > { %777 = vperm.xlu2 %1036, %v1669_v2  }
 0x1fd   : > { %v730_v60 = vpop.permute.xlu1 %729 }
 0x1fe   : > { %804 = vst [vmem:[%s1909_s23 + $0x50] sm:$0xff] %v730_v60 }
 0x203   : > { %1040 = vset.pattern.permute.xlu1 %v694_v11 }
 0x204   : > { %1039 = vset.pattern.permute.xlu2 %v693_v45 }
 0x205   : > { %v751_v17 = vpop.permute.xlu0 %750 }
 0x206   : > { %811 = vst [vmem:[%s1909_s23 + $0x88] sm:$0xff] %v751_v17  ;;  %v742_v27 = vpop.permute.xlu2 %741 }
 0x207   : > { %808 = vst [vmem:[%s1909_s23 + $0x70] sm:$0xff] %v742_v27 }
 0x20b   : > { %789 = vperm.xlu1 %1040, %v1669_v2  }
 0x20c   : > { %786 = vperm.xlu2 %1039, %v1669_v2  }
 0x20d   : > { %v739_v63 = vpop.permute.xlu1 %738 }
 0x20e   : > { %807 = vst [vmem:[%s1909_s23 + $0x68] sm:$0xff] %v739_v63 }
 0x214   : > { %1041 = vset.pattern.permute.xlu2 %v695_v7 }
 0x215   : > { %v766_v35 = vpop.permute.xlu0 %765 }
 0x216   : > { %816 = vst [vmem:[%s1909_s23 + $0xb0] sm:$0xff] %v766_v35  ;;  %v748_v24 = vpop.permute.xlu2 %747 }
 0x217   : > { %810 = vst [vmem:[%s1909_s23 + $0x80] sm:$0xff] %v748_v24 }
 0x21c   : > { %792 = vperm.xlu2 %1041, %v1669_v2  }
 0x21d   : > { %v745_v22 = vpop.permute.xlu1 %744 }
 0x21e   : > { %809 = vst [vmem:[%s1909_s23 + $0x78] sm:$0xff] %v745_v22 }
 0x225   : > { %v781_v43 = vpop.permute.xlu0 %780 }
 0x226   : > { %821 = vst [vmem:[%s1909_s23 + $0xd8] sm:$0xff] %v781_v43  ;;  %v757_v56 = vpop.permute.xlu2 %756 }
 0x227   : > { %813 = vst [vmem:[%s1909_s23 + $0x98] sm:$0xff] %v757_v56 }
 0x22d   : > { %v754_v52 = vpop.permute.xlu1 %753 }
 0x22e   : > { %812 = vst [vmem:[%s1909_s23 + $0x90] sm:$0xff] %v754_v52 }
 0x236   : > { %v763_v47 = vpop.permute.xlu2 %762 }
 0x237   : > { %815 = vst [vmem:[%s1909_s23 + $0xa8] sm:$0xff] %v763_v47 }
 0x23d   : > { %v760_v62 = vpop.permute.xlu1 %759 }
 0x23e   : > { %814 = vst [vmem:[%s1909_s23 + $0xa0] sm:$0xff] %v760_v62 }
 0x246   : > { %v772_v2 = vpop.permute.xlu2 %771 }
 0x247   : > { %818 = vst [vmem:[%s1909_s23 + $0xc0] sm:$0xff] %v772_v2 }
 0x24d   : > { %v769_v3 = vpop.permute.xlu1 %768 }
 0x24e   : > { %817 = vst [vmem:[%s1909_s23 + $0xb8] sm:$0xff] %v769_v3 }
 0x256   : > { %v778_v37 = vpop.permute.xlu2 %777 }
 0x257   : > { %820 = vst [vmem:[%s1909_s23 + $0xd0] sm:$0xff] %v778_v37 }
 0x25d   : > { %v775_v48 = vpop.permute.xlu1 %774 }
 0x25e   : > { %819 = vst [vmem:[%s1909_s23 + $0xc8] sm:$0xff] %v775_v48 }
 0x266   : > { %v787_v7 = vpop.permute.xlu2 %786 }
 0x267   : > { %823 = vst [vmem:[%s1909_s23 + $0xe8] sm:$0xff] %v787_v7 }
 0x26d   : > { %v784_v6 = vpop.permute.xlu1 %783 }
 0x26e   : > { %822 = vst [vmem:[%s1909_s23 + $0xe0] sm:$0xff] %v784_v6 }
 0x276   : > { %v793_v14 = vpop.permute.xlu2 %792 }
 0x277   : > { %825 = vst [vmem:[%s1909_s23 + $0xf8] sm:$0xff] %v793_v14 }
 0x27d   : > { %v790_v16 = vpop.permute.xlu1 %789 }
 0x27e   : > { %824 = vst [vmem:[%s1909_s23 + $0xf0] sm:$0xff] %v790_v16 }
 0x27f   : > { %1131 = shalt.err (!%p1128_p8)
}
 0x280   : > { %s1182_s5 = smov 128   ;;  %s1183_s6 = smov 8  }
 0x281   : > { %949 = dma.vmem_to_hbm [thread:$0]  (%p1251_p11), %s840_s24, 4096, %s842_s19, %s827_s25, %s1182_s5, %s1182_s5, %s1183_s6  }
 0x282 PF: > { %s856_s7 = sand.u32 1, %s1162_s9   ;;  %p2080_p9 = scmp.ge.s32.totalorder %s1174_s12, 2 }
 0x283   : > { %s857_s14 = scalar_lea.sflag [#allocation4], %s856_s7 }
 0x284   : > { %p960_p10 = pnand %p2080_p9, %p1255_p12 }
 0x286   : > { %p961_p1 = pneg %p960_p10 }
 0x288   : > { %1157 = dma.done.wait (%p961_p1), %s857_s14, 4096  }
 0x289   : > { %1159 = vsyncadd (%p961_p1), %s857_s14, 4294963200  ;;  %p16_p2 = scmp.ge.s32.totalorder %s1224_s15, 4   ;;  %s2081_s9 = smov %s1166_s10 }
 0x28a   : > { %s2082_s10 = smov %s1170_s11  ;;  %s2083_s11 = smov %s1236_s18 }
 0x28b   : > { %s2084_s12 = smov %s1224_s15  ;;  %18 = sbr.rel (!%p16_p2) target bundleno = 6 (0x6), region = 77 }
 0x290   :  { %863 = vsyncpa [#allocation3], 1 }
 0x291   :  { %865 = vsyncpa [#allocation3 + $0x1], 1 }
 0x292   :  { %866 = vsyncpa [#allocation6], 1 }
 0x293   :  { %867 = vsyncpa [#allocation4], 1 }
 0x294   :  { %869 = vsyncpa [#allocation4 + $0x1], 1 }

</bundles_post_ra>
